<compile_context>
chip_gen: v7x
topology: tpu7x:2x2x1
jax: 0.10.0
libtpu: 0.0.40
codegen_flags: <defaults>
</compile_context>

<pallas_src>
import functools

import jax
import jax.numpy as jnp
from jax import lax
from jax.experimental import pallas as pl
from jax.experimental.pallas import tpu as pltpu


def _ce_loss_kernel(logits_ref, tgt_ref, out_ref, *,
                    total_classes, label_smoothing, batch_size):
    """Accumulate sum of label-smoothed CE over one batch tile; finalize mean."""
    i = pl.program_id(0)

    @pl.when(i == 0)
    def _():
        out_ref[...] = jnp.zeros_like(out_ref)

    x = logits_ref[...].astype(jnp.float32)            # (TB, C), C == total_classes
    tb, c = x.shape

    # mask rows of a partial last tile (block may extend past the true batch)
    row_ids = i * tb + lax.broadcasted_iota(jnp.int32, (tb, 1), 0)
    row_valid = row_ids < batch_size                    # (TB, 1)

    # numerically-stable log-sum-exp over the class (lane) axis
    m = jnp.max(x, axis=-1, keepdims=True)              # (TB, 1)
    s = jnp.sum(jnp.exp(x - m), axis=-1, keepdims=True) # (TB, 1)
    log_z = m + jnp.log(s)                               # (TB, 1)

    # gather logit of the target class via one-hot select
    class_ids = lax.broadcasted_iota(jnp.int32, (tb, c), 1)
    tgt = tgt_ref[...]                                   # (TB, 1) int32
    x_t = jnp.sum(jnp.where(class_ids == tgt, x, 0.0), axis=-1, keepdims=True)
    sum_x = jnp.sum(x, axis=-1, keepdims=True)           # (TB, 1)

    k = jnp.float32(total_classes)
    nll = log_z - x_t                                    # -log p[target]
    smooth = k * log_z - sum_x                           # sum_c -log p[c]

    ls = jnp.float32(label_smoothing)
    loss = (1.0 - ls) * nll + ls * smooth / k            # (TB, 1)
    loss = jnp.where(row_valid, loss, 0.0)

    out_ref[...] += jnp.sum(loss, axis=0, keepdims=True) # (1, 1)

    @pl.when(i == pl.num_programs(0) - 1)
    def _():
        out_ref[...] = out_ref[...] / jnp.float32(batch_size)


def softmax_with_uncertainty_loss(logits, targets, has_prediction,
                                  num_classes=100, label_smoothing=0.0,
                                  tile_rows=4096):
    """JAX/Pallas equivalent of SoftmaxWithUncertaintyLoss.forward.

    Args:
      logits:          (B, num_classes + 1) float array (model_output.all_logits),
                       f32 or bf16 (kept in its HBM dtype; cast per-tile in-kernel)
      targets:         (B,) int array of class labels
      has_prediction:  (B,) binary mask; 0 => remap target to absent class
      tile_rows:       batch tile size (rows per grid step), multiple of 8
    Returns:
      (mean_ce_loss, mean_ce_loss, 0.0)
    """
    total_classes = num_classes + 1
    b, c = logits.shape
    assert c == total_classes, f"expected {total_classes} logits, got {c}"

    # glue: remap uncertain samples to the absent class (index == num_classes)
    mod_targets = jnp.where(has_prediction == 0, num_classes, targets).astype(jnp.int32)
    tgt2d = mod_targets[:, None]                                        # (B, 1)

    # batch tiling: single full-extent block for small B, else fixed tile
    # (multiple of 8); partial last tile is masked inside the kernel.
    tb = b if b <= tile_rows else tile_rows
    grid = pl.cdiv(b, tb)

    kernel = functools.partial(
        _ce_loss_kernel,
        total_classes=total_classes,
        label_smoothing=float(label_smoothing),
        batch_size=b,
    )

    out = pl.pallas_call(
        kernel,
        out_shape=jax.ShapeDtypeStruct((1, 1), jnp.float32),
        grid_spec=pl.GridSpec(
            grid=(grid,),
            in_specs=[
                pl.BlockSpec((tb, c), lambda i: (i, 0)),   # class dim = full extent
                pl.BlockSpec((tb, 1), lambda i: (i, 0)),
            ],
            out_specs=pl.BlockSpec((1, 1), lambda i: (0, 0)),
        ),
        compiler_params=pltpu.CompilerParams(
            # output block is revisited every step (accumulator) -> arbitrary
            dimension_semantics=("arbitrary",),
        ),
    )(logits, tgt2d)

    mean_ce = out[0, 0]
    return mean_ce, mean_ce, jnp.float32(0.0)


def _reference(logits, targets, has_prediction, num_classes=100, label_smoothing=0.0):
    """Pure-JAX reference matching F.cross_entropy with label smoothing."""
    total_classes = num_classes + 1
    mod_targets = jnp.where(has_prediction == 0, num_classes, targets)
    log_p = jax.nn.log_softmax(logits.astype(jnp.float32), axis=-1)
    nll = -jnp.take_along_axis(log_p, mod_targets[:, None], axis=-1)[:, 0]
    smooth = -jnp.sum(log_p, axis=-1)
    loss = (1.0 - label_smoothing) * nll + label_smoothing * smooth / total_classes
    return jnp.mean(loss)


if __name__ == "__main__":
    key = jax.random.PRNGKey(0)
    k1, k2, k3 = jax.random.split(key, 3)

    num_classes = 100
    label_smoothing = 0.1

    # case 1: small batch, single block
    B = 8
    logits = jax.random.normal(k1, (B, num_classes + 1), dtype=jnp.float32)
    targets = jax.random.randint(k2, (B,), 0, num_classes, dtype=jnp.int32)
    has_prediction = jax.random.randint(k3, (B,), 0, 2, dtype=jnp.int32)

    total, ce, dummy = softmax_with_uncertainty_loss(
        logits, targets, has_prediction,
        num_classes=num_classes, label_smoothing=label_smoothing,
    )
    total = jax.block_until_ready(total)
    ref = _reference(logits, targets, has_prediction,
                     num_classes=num_classes, label_smoothing=label_smoothing)
    assert jnp.allclose(total, ref, rtol=1e-5, atol=1e-5), (total, ref)
    assert jnp.allclose(ce, total)
    assert float(dummy) == 0.0

    # case 2: exercise batch tiling + partial-last-tile masking (B=20, tile=8)
    k4, k5, k6 = jax.random.split(jax.random.PRNGKey(1), 3)
    B2 = 20
    logits2 = jax.random.normal(k4, (B2, num_classes + 1), dtype=jnp.float32)
    targets2 = jax.random.randint(k5, (B2,), 0, num_classes, dtype=jnp.int32)
    has_pred2 = jax.random.randint(k6, (B2,), 0, 2, dtype=jnp.int32)

    total2, ce2, dummy2 = softmax_with_uncertainty_loss(
        logits2, targets2, has_pred2,
        num_classes=num_classes, label_smoothing=label_smoothing,
        tile_rows=8,
    )
    total2 = jax.block_until_ready(total2)
    ref2 = _reference(logits2, targets2, has_pred2,
                      num_classes=num_classes, label_smoothing=label_smoothing)
    assert jnp.allclose(total2, ref2, rtol=1e-5, atol=1e-5), (total2, ref2)
    assert jnp.allclose(ce2, total2)
    assert float(dummy2) == 0.0

    print("KERNEL_OK")
</pallas_src>

<mosaic_0001>
module attributes {stable_mosaic.version = 11 : i64} {
  func.func @_ce_loss_kernel(%arg0: i32, %arg1: memref<8x101xf32, #tpu.memory_space<vmem>>, %arg2: memref<8x1xi32, #tpu.memory_space<vmem>>, %arg3: memref<1x1xf32, #tpu.memory_space<vmem>>) attributes {dimension_semantics = [#tpu.dimension_semantics<arbitrary>], iteration_bounds = array<i64: 1>, scalar_prefetch = 0 : i64, scratch_operands = 0 : i64, tpu.core_type = #tpu.core_type<tc>, window_params = [{transform_indices = @transform_0, window_bounds = array<i64: 8, 101>}, {transform_indices = @transform_1, window_bounds = array<i64: 8, 1>}, {pipeline_mode = #tpu.pipeline_mode<synchronous>, transform_indices = @transform_2, window_bounds = array<i64: 1, 1>}]} {
    %c0_i32 = arith.constant 0 : i32
    %0 = arith.cmpi eq, %arg0, %c0_i32 : i32
    %1 = arith.extui %0 : i1 to i32
    %c0_i32_0 = arith.constant 0 : i32
    %2 = arith.cmpi ne, %1, %c0_i32_0 : i32
    scf.if %2 {
      %cst_22 = arith.constant 0.000000e+00 : f32
      %51 = vector.broadcast %cst_22 : f32 to vector<1x1xf32>
      %c0_23 = arith.constant 0 : index
      %c0_24 = arith.constant 0 : index
      %52 = vector.load %arg3[%c0_23, %c0_24] : memref<1x1xf32, #tpu.memory_space<vmem>>, vector<1x1xf32>
      tpu.vector_store %arg3[%c0_23, %c0_24], %51 {strides = array<i32>} : memref<1x1xf32, #tpu.memory_space<vmem>>, vector<1x1xf32>,
    } else {
    }
    %c0 = arith.constant 0 : index
    %c0_1 = arith.constant 0 : index
    %3 = vector.load %arg1[%c0, %c0_1] : memref<8x101xf32, #tpu.memory_space<vmem>>, vector<8x101xf32>
    %c8_i32 = arith.constant 8 : i32
    %4 = arith.muli %arg0, %c8_i32 : i32
    %5 = tpu.iota {dimensions = array<i32: 0>} : vector<8x1xi32>
    %6 = vector.broadcast %4 : i32 to vector<8x1xi32>
    %7 = arith.addi %6, %5 : vector<8x1xi32>
    %c8_i32_2 = arith.constant 8 : i32
    %8 = vector.broadcast %c8_i32_2 : i32 to vector<8x1xi32>
    %9 = arith.cmpi slt, %7, %8 : vector<8x1xi32>
    %cst = arith.constant dense<0xFF800000> : vector<8xf32>
    %10 = vector.multi_reduction <maximumf>, %3, %cst [1] : vector<8x101xf32> to vector<8xf32>
    %11 = vector.shape_cast %10 : vector<8xf32> to vector<8x1xf32>
    %12 = vector.broadcast %11 : vector<8x1xf32> to vector<8x101xf32>
    %13 = arith.subf %3, %12 : vector<8x101xf32>
    %14 = math.exp %13 : vector<8x101xf32>
    %cst_3 = arith.constant dense<0.000000e+00> : vector<8xf32>
    %15 = vector.multi_reduction <add>, %14, %cst_3 [1] : vector<8x101xf32> to vector<8xf32>
    %16 = vector.shape_cast %15 : vector<8xf32> to vector<8x1xf32>
    %17 = math.log %16 : vector<8x1xf32>
    %18 = arith.addf %11, %17 : vector<8x1xf32>
    %19 = tpu.iota {dimensions = array<i32: 1>} : vector<8x101xi32>
    %c0_4 = arith.constant 0 : index
    %c0_5 = arith.constant 0 : index
    %20 = vector.load %arg2[%c0_4, %c0_5] : memref<8x1xi32, #tpu.memory_space<vmem>>, vector<8x1xi32>
    %21 = vector.broadcast %20 : vector<8x1xi32> to vector<8x101xi32>
    %22 = arith.cmpi eq, %19, %21 : vector<8x101xi32>
    %cst_6 = arith.constant 0.000000e+00 : f32
    %23 = vector.broadcast %cst_6 : f32 to vector<8x101xf32>
    %24 = arith.select %22, %3, %23 : vector<8x101xi1>, vector<8x101xf32>
    %cst_7 = arith.constant dense<0.000000e+00> : vector<8xf32>
    %25 = vector.multi_reduction <add>, %24, %cst_7 [1] : vector<8x101xf32> to vector<8xf32>
    %26 = vector.shape_cast %25 : vector<8xf32> to vector<8x1xf32>
    %cst_8 = arith.constant dense<0.000000e+00> : vector<8xf32>
    %27 = vector.multi_reduction <add>, %3, %cst_8 [1] : vector<8x101xf32> to vector<8xf32>
    %28 = vector.shape_cast %27 : vector<8xf32> to vector<8x1xf32>
    %29 = arith.subf %18, %26 : vector<8x1xf32>
    %cst_9 = arith.constant 1.010000e+02 : f32
    %30 = vector.broadcast %cst_9 : f32 to vector<8x1xf32>
    %31 = arith.mulf %30, %18 : vector<8x1xf32>
    %32 = arith.subf %31, %28 : vector<8x1xf32>
    %cst_10 = arith.constant 1.000000e+00 : f32
    %cst_11 = arith.constant 1.000000e-01 : f32
    %33 = arith.subf %cst_10, %cst_11 : f32
    %34 = vector.broadcast %33 : f32 to vector<8x1xf32>
    %35 = arith.mulf %34, %29 : vector<8x1xf32>
    %cst_12 = arith.constant 1.000000e-01 : f32
    %36 = vector.broadcast %cst_12 : f32 to vector<8x1xf32>
    %37 = arith.mulf %36, %32 : vector<8x1xf32>
    %cst_13 = arith.constant 1.010000e+02 : f32
    %38 = vector.broadcast %cst_13 : f32 to vector<8x1xf32>
    %39 = arith.divf %37, %38 : vector<8x1xf32>
    %40 = arith.addf %35, %39 : vector<8x1xf32>
    %cst_14 = arith.constant 0.000000e+00 : f32
    %41 = vector.broadcast %cst_14 : f32 to vector<8x1xf32>
    %42 = arith.select %9, %40, %41 : vector<8x1xi1>, vector<8x1xf32>
    %c0_15 = arith.constant 0 : index
    %c0_16 = arith.constant 0 : index
    %43 = vector.load %arg3[%c0_15, %c0_16] : memref<1x1xf32, #tpu.memory_space<vmem>>, vector<1x1xf32>
    %cst_17 = arith.constant dense<0.000000e+00> : vector<1xf32>
    %44 = vector.multi_reduction <add>, %42, %cst_17 [0] : vector<8x1xf32> to vector<1xf32>
    %45 = vector.shape_cast %44 : vector<1xf32> to vector<1x1xf32>
    %46 = arith.addf %43, %45 : vector<1x1xf32>
    %c0_18 = arith.constant 0 : index
    %c0_19 = arith.constant 0 : index
    %47 = vector.load %arg3[%c0_18, %c0_19] : memref<1x1xf32, #tpu.memory_space<vmem>>, vector<1x1xf32>
    tpu.vector_store %arg3[%c0_18, %c0_19], %46 {strides = array<i32>} : memref<1x1xf32, #tpu.memory_space<vmem>>, vector<1x1xf32>,
    %c0_i32_20 = arith.constant 0 : i32
    %48 = arith.cmpi eq, %arg0, %c0_i32_20 : i32
    %49 = arith.extui %48 : i1 to i32
    %c0_i32_21 = arith.constant 0 : i32
    %50 = arith.cmpi ne, %49, %c0_i32_21 : i32
    scf.if %50 {
      %c0_22 = arith.constant 0 : index
      %c0_23 = arith.constant 0 : index
      %51 = vector.load %arg3[%c0_22, %c0_23] : memref<1x1xf32, #tpu.memory_space<vmem>>, vector<1x1xf32>
      %cst_24 = arith.constant 8.000000e+00 : f32
      %52 = vector.broadcast %cst_24 : f32 to vector<1x1xf32>
      %53 = arith.divf %51, %52 : vector<1x1xf32>
      %c0_25 = arith.constant 0 : index
      %c0_26 = arith.constant 0 : index
      %54 = vector.load %arg3[%c0_25, %c0_26] : memref<1x1xf32, #tpu.memory_space<vmem>>, vector<1x1xf32>
      tpu.vector_store %arg3[%c0_25, %c0_26], %53 {strides = array<i32>} : memref<1x1xf32, #tpu.memory_space<vmem>>, vector<1x1xf32>,
    } else {
    }
    return
  }
  func.func @transform_0(%arg0: i32) -> (i32, i32) {
    %c0_i32 = arith.constant 0 : i32
    %c0_i32_0 = arith.constant 0 : i32
    return %arg0, %c0_i32 : i32, i32
  }
  func.func @transform_1(%arg0: i32) -> (i32, i32) {
    %c0_i32 = arith.constant 0 : i32
    %c0_i32_0 = arith.constant 0 : i32
    return %arg0, %c0_i32 : i32, i32
  }
  func.func @transform_2(%arg0: i32) -> (i32, i32) {
    %c0_i32 = arith.constant 0 : i32
    %c0_i32_0 = arith.constant 0 : i32
    %c0_i32_1 = arith.constant 0 : i32
    return %c0_i32, %c0_i32_0 : i32, i32
  }
}

</mosaic_0001>

<bundles_post_ra>
// kernel: tpu_custom_call.1
= control target key start
LH: loop header
LB: loop body
LE: loop exit
PB: predicated region body
PF: predicated region fallthrough
CT: control target
= control target key end

     0   :  { %vm25_vm0 = vcmask 826368   ;;  %s167_s0 = inlined_call_operand.vmem [shape: f32[8,101], index: 0, kind: input, shape index: {}]   ;;  %s168_s1 = inlined_call_operand.vmem [shape: s32[8,1], index: 1, kind: input, shape index: {}]   ;;  %s169_s2 = inlined_call_operand.hbm [shape: f32[1,1], index: 2, kind: output, shape index: {}]  }
   0x1   :  { %v18_v0 = vld [vmem:[%s167_s0] sm:$0xff] }
   0x2   :  { %7 = vsyncpa [#allocation3], 0  ;;  %v26_v1 = vsel %vm25_vm0, %v18_v0, -inf  ;;  %v124_v2 = vmov 0   ;;  %v40_v3 = vld [vmem:[%s168_s1] sm:$0xff]  ;;  %v38_v7 = vlaneseq  ;;  %v49_v12 = vsel %vm25_vm0, %v18_v0, 0.0 }
   0x3   :  { %95 = vset.pattern.permute.xlu0 %v124_v2  ;;  %vm16_vm2 = vcmask 0   ;;  %v125_v15 = vmov 0.0   ;;  %s126_s0 = smov [#allocation2]  }
   0x4   :  { %27 = vmax.xlane.f32.xlu0 %v26_v1  ;;  %v39_v8 = vand.u32 127, %v38_v7  ;;  %17 = vst.msk [vmem:[#allocation2] sm:$0x1] %vm16_vm2, %v125_v15  ;;  %s84_s1 = sshll.u32 %s126_s0, 4  ;;  %s85_s1 = int_to_ptr.vmem [resolvable:$true] %s84_s1 }
   0x5   :  { %s100_s13 = scalar_lea.vmem %s85_s1, 16  ;;  %s104_s14 = scalar_lea.vmem %s85_s1, 32 }
   0x6   :  { %p101_p0 = scmp.ne.s32.totalorder %s85_s1, %s100_s13  ;;  %p105_p1 = scmp.lt.s32.totalorder %s85_s1, %s85_s1 }
   0x7   :  { %p106_p2 = scmp.lt.s32.totalorder %s104_s14, %s100_s13 }
   0x9   :  { %p107_p3 = por %p106_p2, %p105_p1 }
   0xb   :  { %v61_v34 = vld [vmem:[#allocation2] sm:$0x1]  ;;  %p108_p4 = pnand %p107_p3, %p101_p0 }
  0x1a   :  { %42 = vperm.xlu0 %95, %v40_v3  }
  0x91   :  { %v28_v4 = vpop.xlane.xlu0 %27 }
  0x92   :  { %v29_v5 = vsub.f32 %v18_v0, %v28_v4 }
  0x94   :  { %v30_v6 = vmul.f32 1.442695, %v29_v5 }
  0x96   :  { %96 = vpow2.f32 %v30_v6 }
  0x99   :  { %v43_v9 = vpop.permute.xlu0 %42 }
  0x9a   :  { %vm44_vm1 = vcmp.eq.s32.totalorder %v39_v8, %v43_v9 }
  0x9b   :  { %v45_v13 = vsel %vm44_vm1, %v18_v0, 0.0 }
  0x9c   :  { %v46_v14 = vsel %vm25_vm0, %v45_v13, 0.0 }
  0xa0   :  { %v97_v10 = vpop.eup %96 }
  0xa1   :  { %v32_v11 = vsel %vm25_vm0, %v97_v10, 0.0 }
  0xa2   :  { %33 = vadd.xlane.f32.xlu1 %v32_v11 }
  0xa6   :  { %50 = vadd.xlane.f32.xlu1 %v49_v12 }
  0xaa   :  { %47 = vadd.xlane.f32.xlu1 %v46_v14 }
 0x12f   :  { %v34_v16 = vpop.xlane.xlu1 %33 }
 0x130   :  { %98 = vlog2.f32 %v34_v16 }
 0x133   :  { %v51_v17 = vpop.xlane.xlu1 %50 }
 0x137   :  { %v48_v21 = vpop.xlane.xlu1 %47 }
 0x13a   :  { %v99_v18 = vpop.eup %98 }
 0x13b   :  { %v36_v19 = vmul.f32 0.6931472, %v99_v18 }
 0x13d   :  { %v37_v20 = vadd.f32 %v36_v19, %v28_v4 }
 0x13f   :  { %v53_v22 = vmul.f32 101.0, %v37_v20  ;;  %v52_v24 = vsub.f32 %v37_v20, %v48_v21 }
 0x141   :  { %v54_v23 = vsub.f32 %v53_v22, %v51_v17  ;;  %v55_v27 = vmul.f32 0.9, %v52_v24 }
 0x143   :  { %v56_v25 = vmul.f32 0.1, %v54_v23 }
 0x145   :  { %v58_v26 = vmul.f32 0.00990099, %v56_v25 }
 0x147   :  { %v59_v28 = vadd.f32 %v58_v26, %v55_v27 }
 0x149   :  { %v62_v29 = vrot.slane %v59_v28, 4 }
 0x14b   :  { %v63_v30 = vadd.f32 %v62_v29, %v59_v28 }
 0x14d   :  { %v64_v31 = vrot.slane %v63_v30, 2 }
 0x14f   :  { %v65_v32 = vadd.f32 %v64_v31, %v63_v30 }
 0x151   :  { %v66_v33 = vrot.slane %v65_v32, 1 }
 0x153   :  { %v67_v35 = vadd.f32 %v66_v33, %v65_v32 }
 0x155   :  { %v68_v36 = vadd.f32 %v67_v35, %v61_v34 }
 0x157   :  { %70 = vst.msk [vmem:[#allocation2] sm:$0x1] %vm16_vm2, %v68_v36 }
 0x15e   :  { %v74_v37 = vld [vmem:[#allocation2] sm:$0x1] }
 0x15f   :  { %v76_v38 = vmul.f32 0.125, %v74_v37 }
 0x161   :  { %77 = vst.msk [vmem:[#allocation2] sm:$0x1] %vm16_vm2, %v76_v38 }
 0x162   :  { %111 = shalt.err (!%p108_p4)
}
 0x163   :  { %s112_s17 = scalar_lea.hbm %s169_s2, 16 }
 0x164   :  { %p113_p5 = scmp.ne.s32.totalorder %s169_s2, %s112_s17  ;;  %p116_p6 = scmp.lt.u32.totalorder %s112_s17, %s169_s2 }
 0x166   :  { %p118_p7 = pnand %p116_p6, %p113_p5 }
 0x168   :  { %121 = shalt.err (!%p118_p7)
}
 0x169   :  { %87 = dma.vmem_to_hbm [thread:$0]  %s85_s1, 16, %s169_s2, [#allocation3]  }
 0x16a   :  { %122 = dma.done.wait [#allocation3], 16  }
 0x16b   :  { %123 = vsyncadd [#allocation3], 4294967280 }
 0x16c   :  { %91 = vsyncpa [#allocation3], 1 }

</bundles_post_ra>
